<compile_context>
chip_gen: v7x
topology: tpu7x:2x2x1
jax: 0.10.0
libtpu: 0.0.40
codegen_flags: <defaults>
</compile_context>

<pallas_src>
import functools

import jax
import jax.numpy as jnp
from jax.experimental import pallas as pl
from jax.experimental.pallas import tpu as pltpu


S1, S2, S3 = 583, 10, 5  # input dim, hidden dim, output dim (from Brain1.__init__)


def _round_up(x, m):
    return ((x + m - 1) // m) * m


def brain1_kernel(x_ref, w1_ref, b1_ref, w2_ref, b2_ref, o_ref):
    x = x_ref[...]                                    # (TB, 583) f32 tile
    # Linear1 + ReLU  (MXU matmul, f32 accumulation; bias broadcast-add on VPU)
    h1 = jnp.dot(x, w1_ref[...], preferred_element_type=jnp.float32) + b1_ref[...]
    h1 = jnp.maximum(h1, 0.0)
    # Linear2
    h2 = jnp.dot(h1, w2_ref[...], preferred_element_type=jnp.float32) + b2_ref[...]
    # Numerically-stable softmax over the last (size-5) dim.  Exact divide: the
    # kernel is HBM-bound, so the precise op is free and matches torch.softmax.
    m = jnp.max(h2, axis=-1, keepdims=True)
    e = jnp.exp(h2 - m)
    o_ref[...] = e / jnp.sum(e, axis=-1, keepdims=True)


@functools.partial(jax.jit, static_argnames=("tb",))
def brain1_forward(x, w1, b1, w2, b2, *, tb=4096):
    """x: (B, 583) f32; w1: (583, 10); b1: (1, 10); w2: (10, 5); b2: (1, 5)."""
    B = x.shape[0]

    # Batch-tile selection (all Python ints, static under jit):
    #  * B < 8   -> a single full-extent block (allowed: block dim == array dim).
    #  * B >= 8  -> sublane-aligned tile, capped so the grid keeps >= ~8 steps
    #              (v7x megacore sharding + DMA pipelining need multiple steps).
    if B >= 8:
        tb = max(8, min(tb, _round_up(pl.cdiv(B, 8), 8)))
        tb = (tb // 8) * 8
    else:
        tb = B
    grid = (pl.cdiv(B, tb),)  # ragged: Pallas masks the partial last block

    # Scoped-VMEM budget: double-buffered x tile + double-buffered (lane-padded)
    # output tile + two copies of the tiny resident weights, with 25% + 2 MiB
    # headroom.  Never below the 32 MiB default; capped at 56 MiB (< v7x 64 MiB).
    x_buf = 2 * tb * S1 * 4
    o_buf = 2 * tb * 128 * 4
    w_buf = 2 * 4 * (_round_up(S1, 8) * 128 + 8 * 128 + 16 * 128 + 8 * 128)
    vmem_limit = max(32 << 20,
                     min(int(1.25 * (x_buf + o_buf + w_buf)) + (2 << 20), 56 << 20))

    return pl.pallas_call(
        brain1_kernel,
        out_shape=jax.ShapeDtypeStruct((B, S3), jnp.float32),
        grid=grid,
        in_specs=[
            pl.BlockSpec((tb, S1), lambda i: (i, 0)),   # x: streamed per batch tile
            pl.BlockSpec((S1, S2), lambda i: (0, 0)),   # w1: resident in VMEM
            pl.BlockSpec((1, S2), lambda i: (0, 0)),    # b1: resident
            pl.BlockSpec((S2, S3), lambda i: (0, 0)),   # w2: resident
            pl.BlockSpec((1, S3), lambda i: (0, 0)),    # b2: resident
        ],
        out_specs=pl.BlockSpec((tb, S3), lambda i: (i, 0)),
        compiler_params=pltpu.CompilerParams(
            dimension_semantics=("parallel",),
            vmem_limit_bytes=vmem_limit,
        ),
    )(x, w1, b1, w2, b2)


def init_params(key):
    """Deterministic init mimicking torch.nn.Linear (uniform(-1/sqrt(fan_in), +1/sqrt(fan_in)))."""
    k1, k2, k3, k4 = jax.random.split(key, 4)
    lim1 = 1.0 / jnp.sqrt(jnp.float32(S1))
    lim2 = 1.0 / jnp.sqrt(jnp.float32(S2))
    w1 = jax.random.uniform(k1, (S1, S2), jnp.float32, -lim1, lim1)
    b1 = jax.random.uniform(k2, (1, S2), jnp.float32, -lim1, lim1)
    w2 = jax.random.uniform(k3, (S2, S3), jnp.float32, -lim2, lim2)
    b2 = jax.random.uniform(k4, (1, S3), jnp.float32, -lim2, lim2)
    return w1, b1, w2, b2


def reference_forward(x, w1, b1, w2, b2):
    h1 = jnp.maximum(x @ w1 + b1, 0.0)
    h2 = h1 @ w2 + b2
    return jax.nn.softmax(h2, axis=-1)


if __name__ == "__main__":
    key = jax.random.PRNGKey(0)
    kx, kp = jax.random.split(key)
    w1, b1, w2, b2 = init_params(kp)

    # batch=2 : single full-extent block;  batch=13 : exercises the masked
    # (ragged) last block of the cdiv grid, per the review's correctness note.
    for batch in (2, 13):
        x = jax.random.normal(jax.random.fold_in(kx, batch), (batch, S1), jnp.float32)

        out = jax.block_until_ready(brain1_forward(x, w1, b1, w2, b2))
        ref = reference_forward(x, w1, b1, w2, b2)

        assert out.shape == (batch, S3)
        # Tolerance covers possible default-precision differences between the
        # Mosaic MXU matmul and XLA's reference matmul; the softmax itself is exact.
        max_err = jnp.max(jnp.abs(out - ref))
        assert jnp.allclose(out, ref, atol=2e-3, rtol=2e-3), (batch, float(max_err))
        # Softmax rows sum to 1 (exact divide, so this is tight).
        assert jnp.allclose(jnp.sum(out, axis=-1), jnp.ones((batch,)), atol=1e-4)

    print("KERNEL_OK")
</pallas_src>

<mosaic_0001>
module attributes {stable_mosaic.version = 11 : i64} {
  func.func @brain1_kernel(%arg0: i32, %arg1: memref<2x583xf32, #tpu.memory_space<vmem>>, %arg2: memref<583x10xf32, #tpu.memory_space<vmem>>, %arg3: memref<1x10xf32, #tpu.memory_space<vmem>>, %arg4: memref<10x5xf32, #tpu.memory_space<vmem>>, %arg5: memref<1x5xf32, #tpu.memory_space<vmem>>, %arg6: memref<2x5xf32, #tpu.memory_space<vmem>>) attributes {dimension_semantics = [#tpu.dimension_semantics<parallel>], iteration_bounds = array<i64: 1>, scalar_prefetch = 0 : i64, scratch_operands = 0 : i64, tpu.core_type = #tpu.core_type<tc>, window_params = [{transform_indices = @transform_0, window_bounds = array<i64: 2, 583>}, {pipeline_mode = #tpu.pipeline_mode<synchronous>, transform_indices = @transform_1, window_bounds = array<i64: 583, 10>}, {pipeline_mode = #tpu.pipeline_mode<synchronous>, transform_indices = @transform_2, window_bounds = array<i64: 1, 10>}, {pipeline_mode = #tpu.pipeline_mode<synchronous>, transform_indices = @transform_3, window_bounds = array<i64: 10, 5>}, {pipeline_mode = #tpu.pipeline_mode<synchronous>, transform_indices = @transform_4, window_bounds = array<i64: 1, 5>}, {transform_indices = @transform_5, window_bounds = array<i64: 2, 5>}]} {
    %c0 = arith.constant 0 : index
    %c0_0 = arith.constant 0 : index
    %0 = vector.load %arg1[%c0, %c0_0] : memref<2x583xf32, #tpu.memory_space<vmem>>, vector<2x583xf32>
    %c0_1 = arith.constant 0 : index
    %c0_2 = arith.constant 0 : index
    %1 = vector.load %arg2[%c0_1, %c0_2] : memref<583x10xf32, #tpu.memory_space<vmem>>, vector<583x10xf32>
    %cst = arith.constant dense<0.000000e+00> : vector<2x10xf32>
    %2 = tpu.matmul %0, %1, %cst {dimension_numbers = #tpu.dot_dimension_numbers<[1], [0], [0], [1], [0, 0, 1, 1], [], []>} : vector<2x583xf32>, vector<583x10xf32>, vector<2x10xf32> -> vector<2x10xf32>
    %c0_3 = arith.constant 0 : index
    %c0_4 = arith.constant 0 : index
    %3 = vector.load %arg3[%c0_3, %c0_4] : memref<1x10xf32, #tpu.memory_space<vmem>>, vector<1x10xf32>
    %4 = vector.broadcast %3 : vector<1x10xf32> to vector<2x10xf32>
    %5 = arith.addf %2, %4 : vector<2x10xf32>
    %cst_5 = arith.constant 0.000000e+00 : f32
    %6 = vector.broadcast %cst_5 : f32 to vector<2x10xf32>
    %7 = arith.maximumf %5, %6 : vector<2x10xf32>
    %c0_6 = arith.constant 0 : index
    %c0_7 = arith.constant 0 : index
    %8 = vector.load %arg4[%c0_6, %c0_7] : memref<10x5xf32, #tpu.memory_space<vmem>>, vector<10x5xf32>
    %cst_8 = arith.constant dense<0.000000e+00> : vector<2x5xf32>
    %9 = tpu.matmul %7, %8, %cst_8 {dimension_numbers = #tpu.dot_dimension_numbers<[1], [0], [0], [1], [0, 0, 1, 1], [], []>} : vector<2x10xf32>, vector<10x5xf32>, vector<2x5xf32> -> vector<2x5xf32>
    %c0_9 = arith.constant 0 : index
    %c0_10 = arith.constant 0 : index
    %10 = vector.load %arg5[%c0_9, %c0_10] : memref<1x5xf32, #tpu.memory_space<vmem>>, vector<1x5xf32>
    %11 = vector.broadcast %10 : vector<1x5xf32> to vector<2x5xf32>
    %12 = arith.addf %9, %11 : vector<2x5xf32>
    %cst_11 = arith.constant dense<0xFF800000> : vector<2xf32>
    %13 = vector.multi_reduction <maximumf>, %12, %cst_11 [1] : vector<2x5xf32> to vector<2xf32>
    %14 = vector.shape_cast %13 : vector<2xf32> to vector<2x1xf32>
    %15 = vector.broadcast %14 : vector<2x1xf32> to vector<2x5xf32>
    %16 = arith.subf %12, %15 : vector<2x5xf32>
    %17 = math.exp %16 : vector<2x5xf32>
    %cst_12 = arith.constant dense<0.000000e+00> : vector<2xf32>
    %18 = vector.multi_reduction <add>, %17, %cst_12 [1] : vector<2x5xf32> to vector<2xf32>
    %19 = vector.shape_cast %18 : vector<2xf32> to vector<2x1xf32>
    %20 = vector.broadcast %19 : vector<2x1xf32> to vector<2x5xf32>
    %21 = arith.divf %17, %20 : vector<2x5xf32>
    %c0_13 = arith.constant 0 : index
    %c0_14 = arith.constant 0 : index
    %22 = vector.load %arg6[%c0_13, %c0_14] : memref<2x5xf32, #tpu.memory_space<vmem>>, vector<2x5xf32>
    tpu.vector_store %arg6[%c0_13, %c0_14], %21 {strides = array<i32>} : memref<2x5xf32, #tpu.memory_space<vmem>>, vector<2x5xf32>,
    return
  }
  func.func @transform_0(%arg0: i32) -> (i32, i32) {
    %c0_i32 = arith.constant 0 : i32
    %c0_i32_0 = arith.constant 0 : i32
    return %arg0, %c0_i32 : i32, i32
  }
  func.func @transform_1(%arg0: i32) -> (i32, i32) {
    %c0_i32 = arith.constant 0 : i32
    %c0_i32_0 = arith.constant 0 : i32
    %c0_i32_1 = arith.constant 0 : i32
    return %c0_i32, %c0_i32_0 : i32, i32
  }
  func.func @transform_2(%arg0: i32) -> (i32, i32) {
    %c0_i32 = arith.constant 0 : i32
    %c0_i32_0 = arith.constant 0 : i32
    %c0_i32_1 = arith.constant 0 : i32
    return %c0_i32, %c0_i32_0 : i32, i32
  }
  func.func @transform_3(%arg0: i32) -> (i32, i32) {
    %c0_i32 = arith.constant 0 : i32
    %c0_i32_0 = arith.constant 0 : i32
    %c0_i32_1 = arith.constant 0 : i32
    return %c0_i32, %c0_i32_0 : i32, i32
  }
  func.func @transform_4(%arg0: i32) -> (i32, i32) {
    %c0_i32 = arith.constant 0 : i32
    %c0_i32_0 = arith.constant 0 : i32
    %c0_i32_1 = arith.constant 0 : i32
    return %c0_i32, %c0_i32_0 : i32, i32
  }
  func.func @transform_5(%arg0: i32) -> (i32, i32) {
    %c0_i32 = arith.constant 0 : i32
    %c0_i32_0 = arith.constant 0 : i32
    return %arg0, %c0_i32 : i32, i32
  }
}

</mosaic_0001>

<bundles_post_ra>
// kernel: brain1_forward.1
= control target key start
LH: loop header
LB: loop body
LE: loop exit
PB: predicated region body
PF: predicated region fallthrough
CT: control target
= control target key end

     0   :  { %v698_v43 = vmov 1983009808   ;;  %v109_v45 = vlaneseq  ;;  %s986_s0 = inlined_call_operand.vmem [shape: f32[2,583], index: 0, kind: input, shape index: {}]   ;;  %s987_s1 = inlined_call_operand.vmem [shape: f32[583,10], index: 1, kind: input, shape index: {}]   ;;  %s988_s2 = inlined_call_operand.vmem [shape: f32[1,10], index: 2, kind: input, shape index: {}]   ;;  %s989_s3 = inlined_call_operand.vmem [shape: f32[10,5], index: 3, kind: input, shape index: {}]   ;;  %s990_s4 = inlined_call_operand.vmem [shape: f32[1,5], index: 4, kind: input, shape index: {}]   ;;  %s991_s5 = inlined_call_operand.hbm [shape: f32[2,5], index: 5, kind: output, shape index: {}]  }
   0x1   :  { %v39_v0 = vld [vmem:[%s987_s1 + $0x80] sm:$0xff]  ;;  %v40_v1 = vld [vmem:[%s987_s1 + $0x88] sm:$0xff]  ;;  %v41_v11 = vld [vmem:[%s987_s1 + $0x90] sm:$0xff]  ;;  %v107_v44 = vunpack.c.l.s4 %v698_v43 }
   0x2   :  { %v23_v2 = vld [vmem:[%s987_s1] sm:$0xff]  ;;  %v583_v3 = vpack.c.bf16 %v40_v1, %v39_v0  ;;  %v24_v4 = vld [vmem:[%s987_s1 + $0x8] sm:$0xff]  ;;  %v42_v13 = vld [vmem:[%s987_s1 + $0x98] sm:$0xff]  ;;  %v110_v60 = vshrl.u32 %v109_v45, 7 }
   0x3   :  { %v71_v5 = vld [vmem:[%s987_s1 + $0x180] sm:$0xff]  ;;  %v72_v6 = vld [vmem:[%s987_s1 + $0x188] sm:$0xff]  ;;  %v585_v7 = vpack.c.bf16 %v24_v4, %v23_v2  ;;  %v25_v14 = vld [vmem:[%s987_s1 + $0x10] sm:$0xff]  ;;  %v587_v16 = vpack.c.bf16 %v42_v13, %v41_v11  ;;  %v108_v59 = vunpack.c.0.s8 %v107_v44 }
   0x4   :  { %v615_v8 = vpack.c.bf16 %v72_v6, %v71_v5  ;;  %v55_v9 = vld [vmem:[%s987_s1 + $0x100] sm:$0xff]  ;;  %v56_v10 = vld [vmem:[%s987_s1 + $0x108] sm:$0xff]  ;;  %584 = vmatprep.subr.bf16.mxu0 %v583_v3  ;;  %v26_v15 = vld [vmem:[%s987_s1 + $0x18] sm:$0xff] }
   0x5   :  { %v617_v12 = vpack.c.bf16 %v56_v10, %v55_v9  ;;  %586 = vmatpush3.bf16.msra.mxu0 %v585_v7  ;;  %v589_v17 = vpack.c.bf16 %v26_v15, %v25_v14  ;;  %v73_v18 = vld [vmem:[%s987_s1 + $0x190] sm:$0xff]  ;;  %v74_v19 = vld [vmem:[%s987_s1 + $0x198] sm:$0xff]  ;;  %v43_v23 = vld [vmem:[%s987_s1 + $0xa0] sm:$0xff]  ;;  %v111_v10 = vsub.s32 %v108_v59, %v110_v60 }
   0x6   :  { %616 = vmatprep.subr.bf16.mxu1 %v615_v8  ;;  %v57_v20 = vld [vmem:[%s987_s1 + $0x110] sm:$0xff]  ;;  %v619_v21 = vpack.c.bf16 %v74_v19, %v73_v18  ;;  %v58_v22 = vld [vmem:[%s987_s1 + $0x118] sm:$0xff]  ;;  %v44_v24 = vld [vmem:[%s987_s1 + $0xa8] sm:$0xff]  ;;  %588 = vmatprep.subr.bf16.mxu0 %v587_v16 }
   0x7   :  { %618 = vmatpush3.bf16.msra.mxu1 %v617_v12  ;;  %v621_v25 = vpack.c.bf16 %v58_v22, %v57_v20  ;;  %v591_v26 = vpack.c.bf16 %v44_v24, %v43_v23  ;;  %v27_v27 = vld [vmem:[%s987_s1 + $0x20] sm:$0xff]  ;;  %v28_v28 = vld [vmem:[%s987_s1 + $0x28] sm:$0xff]  ;;  %v45_v35 = vld [vmem:[%s987_s1 + $0xb0] sm:$0xff] }
   0x8   :  { %v75_v29 = vld [vmem:[%s987_s1 + $0x1a0] sm:$0xff]  ;;  %620 = vmatprep.subr.bf16.mxu1 %v619_v21  ;;  %v76_v30 = vld [vmem:[%s987_s1 + $0x1a8] sm:$0xff]  ;;  %v593_v33 = vpack.c.bf16 %v28_v28, %v27_v27  ;;  %v46_v36 = vld [vmem:[%s987_s1 + $0xb8] sm:$0xff] }
   0x9   :  { %v59_v31 = vld [vmem:[%s987_s1 + $0x120] sm:$0xff]  ;;  %v60_v32 = vld [vmem:[%s987_s1 + $0x128] sm:$0xff]  ;;  %590 = vmatpush3.bf16.msra.mxu0 %v589_v17  ;;  %v623_v34 = vpack.c.bf16 %v76_v30, %v75_v29  ;;  %v29_v37 = vld [vmem:[%s987_s1 + $0x30] sm:$0xff]  ;;  %v595_v39 = vpack.c.bf16 %v46_v36, %v45_v35 }
   0xa   :  { %592 = vmatprep.subr.bf16.mxu0 %v591_v26  ;;  %v625_v38 = vpack.c.bf16 %v60_v32, %v59_v31  ;;  %v30_v40 = vld [vmem:[%s987_s1 + $0x38] sm:$0xff]  ;;  %v77_v41 = vld [vmem:[%s987_s1 + $0x1b0] sm:$0xff]  ;;  %v47_v49 = vld [vmem:[%s987_s1 + $0xc0] sm:$0xff] }
   0xb   :  { %622 = vmatpush3.bf16.msra.mxu1 %v621_v25  ;;  %v78_v42 = vld [vmem:[%s987_s1 + $0x1b8] sm:$0xff]  ;;  %v61_v47 = vld [vmem:[%s987_s1 + $0x130] sm:$0xff]  ;;  %v48_v50 = vld [vmem:[%s987_s1 + $0xc8] sm:$0xff]  ;;  %v597_v51 = vpack.c.bf16 %v30_v40, %v29_v37 }
   0xc   :  { %624 = vmatprep.subr.bf16.mxu1 %v623_v34  ;;  %v627_v46 = vpack.c.bf16 %v78_v42, %v77_v41  ;;  %v62_v48 = vld [vmem:[%s987_s1 + $0x138] sm:$0xff]  ;;  %v79_v52 = vld [vmem:[%s987_s1 + $0x1c0] sm:$0xff]  ;;  %v80_v53 = vld [vmem:[%s987_s1 + $0x1c8] sm:$0xff]  ;;  %v599_v55 = vpack.c.bf16 %v48_v50, %v47_v49 }
   0xd   :  { %594 = vmatpush3.bf16.msra.mxu0 %v593_v33  ;;  %v629_v54 = vpack.c.bf16 %v62_v48, %v61_v47  ;;  %v31_v56 = vld [vmem:[%s987_s1 + $0x40] sm:$0xff]  ;;  %v32_v57 = vld [vmem:[%s987_s1 + $0x48] sm:$0xff]  ;;  %v631_v61 = vpack.c.bf16 %v80_v53, %v79_v52  ;;  %v49_v63 = vld [vmem:[%s987_s1 + $0xd0] sm:$0xff] }
   0xe   :  { %596 = vmatprep.subr.bf16.mxu0 %v595_v39  ;;  %v63_v58 = vld [vmem:[%s987_s1 + $0x140] sm:$0xff]  ;;  %v64_v62 = vld [vmem:[%s987_s1 + $0x148] sm:$0xff]  ;;  %v50_v0 = vld [vmem:[%s987_s1 + $0xd8] sm:$0xff]  ;;  %v601_v3 = vpack.c.bf16 %v32_v57, %v31_v56 }
   0xf   :  { %626 = vmatpush3.bf16.msra.mxu1 %v625_v38  ;;  %v81_v1 = vld [vmem:[%s987_s1 + $0x1d0] sm:$0xff]  ;;  %v82_v2 = vld [vmem:[%s987_s1 + $0x1d8] sm:$0xff]  ;;  %v633_v5 = vpack.c.bf16 %v64_v62, %v63_v58  ;;  %v603_v6 = vpack.c.bf16 %v50_v0, %v49_v63  ;;  %v51_v12 = vld [vmem:[%s987_s1 + $0xe0] sm:$0xff] }
  0x10   :  { %628 = vmatprep.subr.bf16.mxu1 %v627_v46  ;;  %v33_v4 = vld [vmem:[%s987_s1 + $0x50] sm:$0xff]  ;;  %v34_v7 = vld [vmem:[%s987_s1 + $0x58] sm:$0xff]  ;;  %v635_v11 = vpack.c.bf16 %v82_v2, %v81_v1  ;;  %v52_v13 = vld [vmem:[%s987_s1 + $0xe8] sm:$0xff] }
  0x11   :  { %598 = vmatpush3.bf16.msra.mxu0 %v597_v51  ;;  %v65_v8 = vld [vmem:[%s987_s1 + $0x150] sm:$0xff]  ;;  %v66_v9 = vld [vmem:[%s987_s1 + $0x158] sm:$0xff]  ;;  %v83_v14 = vld [vmem:[%s987_s1 + $0x1e0] sm:$0xff]  ;;  %v605_v16 = vpack.c.bf16 %v34_v7, %v33_v4  ;;  %v607_v19 = vpack.c.bf16 %v52_v13, %v51_v12 }
  0x12   :  { %600 = vmatprep.subr.bf16.mxu0 %v599_v55  ;;  %v84_v15 = vld [vmem:[%s987_s1 + $0x1e8] sm:$0xff]  ;;  %v637_v17 = vpack.c.bf16 %v66_v9, %v65_v8  ;;  %v21_v18 = vld [vmem:[%s986_s0] sm:$0xff]  ;;  %v53_v27 = vld [vmem:[%s987_s1 + $0xf0] sm:$0xff] }
  0x13   :  { %630 = vmatpush3.bf16.msra.mxu1 %v629_v54  ;;  %v35_v20 = vld [vmem:[%s987_s1 + $0x60] sm:$0xff]  ;;  %v36_v21 = vld [vmem:[%s987_s1 + $0x68] sm:$0xff]  ;;  %v112_v23 = vrot.slane %v21_v18, %v111_v10  ;;  %v105_v24 = vcombine.high %v21_v18, %v21_v18  ;;  %v639_v25 = vpack.c.bf16 %v84_v15, %v83_v14  ;;  %v54_v28 = vld [vmem:[%s987_s1 + $0xf8] sm:$0xff] }
  0x14   :  { %632 = vmatprep.subr.bf16.mxu1 %v631_v61  ;;  %v67_v22 = vld [vmem:[%s987_s1 + $0x160] sm:$0xff]  ;;  %v68_v26 = vld [vmem:[%s987_s1 + $0x168] sm:$0xff]  ;;  %v85_v29 = vld [vmem:[%s987_s1 + $0x1f0] sm:$0xff]  ;;  %v609_v33 = vpack.c.bf16 %v36_v21, %v35_v20 }
  0x15   :  { %602 = vmatpush3.bf16.msra.mxu0 %v601_v3  ;;  %v86_v30 = vld [vmem:[%s987_s1 + $0x1f8] sm:$0xff]  ;;  %v120_v31 = vcombine.high %v112_v23, %v112_v23  ;;  %v119_v32 = vrot.slane %v105_v24, %v111_v10 }
  0x16   :  { %604 = vmatprep.subr.bf16.mxu0 %v603_v6 }
  0x17   :  { %634 = vmatpush3.bf16.msra.mxu1 %v633_v5 }
  0x18   :  { %636 = vmatprep.subr.bf16.mxu1 %v635_v11 }
  0x19   :  { %606 = vmatpush3.bf16.msra.mxu0 %v605_v16 }
  0x1a   :  { %10 = vsyncpa [#allocation3], 0  ;;  %608 = vmatprep.subr.bf16.mxu0 %v607_v19  ;;  %v641_v34 = vpack.c.bf16 %v68_v26, %v67_v22  ;;  %v611_v35 = vpack.c.bf16 %v54_v28, %v53_v27  ;;  %v37_v36 = vld [vmem:[%s987_s1 + $0x70] sm:$0xff]  ;;  %v38_v37 = vld [vmem:[%s987_s1 + $0x78] sm:$0xff]  ;;  %v121_v38 = vcombine.high %v119_v32, %v119_v32  ;;  %v643_v39 = vpack.c.bf16 %v86_v30, %v85_v29 }
  0x1b   :  { %638 = vmatpush3.bf16.msra.mxu1 %v637_v17  ;;  %204 = vmatprep.mubr.f32.mxu0 %v120_v31  ;;  %v69_v40 = vld [vmem:[%s987_s1 + $0x170] sm:$0xff]  ;;  %v70_v41 = vld [vmem:[%s987_s1 + $0x178] sm:$0xff]  ;;  %v613_v42 = vpack.c.bf16 %v38_v37, %v37_v36  ;;  %v87_v44 = vld [vmem:[%s987_s1 + $0x200] sm:$0xff]  ;;  %v699_v47 = vmov 0.0|0.0   ;;  %vm700_vm0 = vmmov 0   ;;  %v701_v53 = vmov 0.0  }
  0x1c   :  { %640 = vmatprep.subr.bf16.mxu1 %v639_v25  ;;  %274 = vmatprep.mubr.f32.mxu1 %v121_v38  ;;  %v645_v43 = vpack.c.bf16 %v70_v41, %v69_v40  ;;  %v88_v45 = vld [vmem:[%s987_s1 + $0x208] sm:$0xff]  ;;  %v89_v48 = vld [vmem:[%s987_s1 + $0x210] sm:$0xff]  ;;  %v90_v49 = vld [vmem:[%s987_s1 + $0x218] sm:$0xff]  ;;  %vm136_vm1 = vcmask 1046528   ;;  %vm133_vm2 = vcmask 580608   ;;  %vm364_vm3 = vcmask 1041408  }
  0x1d   :  { %610 = vmatpush3.bf16.msra.mxu0 %v609_v33  ;;  %v648_v46 = vpack.c.bf16 %v88_v45, %v87_v44  ;;  %v651_v50 = vpack.c.bf16 %v90_v49, %v89_v48  ;;  %v91_v51 = vld [vmem:[%s987_s1 + $0x220] sm:$0xff]  ;;  %v92_v52 = vld [vmem:[%s987_s1 + $0x228] sm:$0xff]  ;;  %v93_v55 = vld [vmem:[%s987_s1 + $0x230] sm:$0xff]  ;;  %vm702_vm4 = vmmov 1   ;;  %vm360_vm6 = vcmask 80896  }
  0x1e   :  { %612 = vmatprep.subr.bf16.mxu0 %v611_v35  ;;  %v654_v54 = vpack.c.bf16 %v92_v52, %v91_v51  ;;  %v94_v56 = vld [vmem:[%s987_s1 + $0x238] sm:$0xff]  ;;  %v95_v58 = vld [vmem:[%s987_s1 + $0x240] sm:$0x7f]  ;;  %v352_v61 = vld [vmem:[%s989_s3 + $0x8] sm:$0x3]  ;;  %vm438_vm7 = vcmask 33792  }
  0x1f   :  { %642 = vmatpush3.bf16.msra.mxu1 %v641_v34  ;;  %v657_v57 = vpack.c.bf16 %v94_v56, %v93_v55  ;;  %v466_v59 = vld.sshfl [vmem:[%s986_s0 + $0x8] sm:$0x3 pattern:$0x76325410]  ;;  %v351_v60 = vld [vmem:[%s989_s3] sm:$0xff]  ;;  %vm661_vm5 = vmpackc.low %vm364_vm3, %vm702_vm4 }
  0x20   :  { %644 = vmatprep.subr.bf16.mxu1 %v643_v39  ;;  %v660_v62 = vpack.c.bf16 %v352_v61, %v351_v60  ;;  %v465_v0 = vld [vmem:[%s988_s2] ss:$0 sm:$0xff]  ;;  %s703_s2 = smov [#allocation2]  }
  0x21   :  { %614 = vmatpush3.bf16.msra.mxu0 %v613_v42  ;;  %v469_v12 = vld [vmem:[%s990_s4] ss:$0 sm:$0xff]  ;;  %s457_s23 = sshll.u32 %s703_s2, 4  ;;  %s458_s23 = int_to_ptr.vmem [resolvable:$true] %s457_s23 }
  0x22   :  { %647 = vmatprep.subr.bf16.mxu0 %v699_v47  ;;  %s674_s4 = scalar_lea.vmem %s458_s23, 32  ;;  %p679_p1 = scmp.lt.s32.totalorder %s458_s23, %s458_s23 }
  0x23   :  { %646 = vmatpush3.bf16.msra.mxu1 %v645_v43  ;;  %p675_p0 = scmp.ne.s32.totalorder %s458_s23, %s674_s4  ;;  %p680_p2 = scmp.lt.s32.totalorder %s674_s4, %s674_s4 }
  0x24   :  { %659 = vmatprep.subr.bf16.mxu1 %v699_v47  ;;  %205 = vmatmul.mubr.f32.vlgmr.msra.gmra.mrb[0].mxu0 %v112_v23 }
  0x25   :  { %649 = vmatpush3.bf16.msra.mxu0 %v648_v46  ;;  %573 = vmatprep.mubr.msk.f32.mxu0 %vm700_vm0, %v701_v53  ;;  %p681_p3 = por %p680_p2, %p679_p1 }
  0x26   :  { %275 = vmatmul.mubr.f32.vlgmr.msra.gmra.mrb[0].mxu1 %v119_v32  ;;  %650 = vmatprep.subr.bf16.mxu0 %v699_v47 }
  0x27   :  { %580 = vmatprep.mubr.msk.f32.mxu1 %vm700_vm0, %v701_v53  ;;  %662 = vmatpush3.bf16.msk.msra.mxu1 %vm661_vm5, %v660_v62  ;;  %p682_p4 = pnand %p681_p3, %p675_p0 }
  0x29   :  { %652 = vmatpush3.bf16.msra.mxu0 %v651_v50 }
  0x2a   :  { %653 = vmatprep.subr.bf16.mxu0 %v699_v47 }
  0x2d   :  { %655 = vmatpush3.bf16.msra.mxu0 %v654_v54 }
  0x2e   :  { %656 = vmatprep.subr.bf16.mxu0 %v699_v47 }
  0x31   :  { %658 = vmatpush3.bf16.msra.mxu0 %v657_v57 }
  0x32   :  { %571 = vmatprep.subr.mxu0 %v701_v53 }
  0x35   :  { %572 = vmatpush3.msk.msra.mxu0 %vm136_vm1, %v95_v58 }
  0x36   :  { %574 = vmatmul.mubr.msk.f32.vlgmr.msra.gmra.mrb[2].mxu0 %vm133_vm2, %v466_v59 }
  0xf7   :  { %v504_v63 = vpop.f32.mrb[0].mxu0 }
  0xf8   :  { %v505_v1 = vpop.f32.mrb[1].mxu0 }
  0xf9   :  { %v539_v2 = vpop.f32.mrb[0].mxu1  ;;  %v506_v3 = vadd.f32 %v505_v1, %v504_v63 }
  0xfa   :  { %v540_v4 = vpop.f32.mrb[1].mxu1 }
  0xfb   :  { %v541_v5 = vadd.f32 %v540_v4, %v539_v2  ;;  %v207_v6 = vadd.f32 %v506_v3, %v465_v0 }
  0xfd   :  { %v277_v7 = vadd.f32 %v541_v5, %v207_v6 }
 0x109   :  { %v346_v8 = vpop.f32.mrb[2].mxu0 }
 0x10a   :  { %v347_v9 = vadd.f32 %v346_v8, %v277_v7  ;;  %v575_v10 = vpop.f32.mrb[3].mxu0 }
 0x10c   :  { %v350_v11 = vmax.f32 %v347_v9, 0.0 }
 0x10e   :  { %581 = vmatmul.mubr.msk.f32.vlgmr.msra.gmra.mrb[2].mxu1 %vm360_vm6, %v350_v11 }
 0x1e1   :  { %v434_v13 = vpop.f32.mrb[2].mxu1 }
 0x1e2   :  { %v435_v14 = vadd.f32 %v469_v12, %v434_v13  ;;  %v582_v15 = vpop.f32.mrb[3].mxu1 }
 0x1e4   :  { %v439_v16 = vsel %vm438_vm7, %v435_v14, -inf }
 0x1e5   :  { %440 = vmax.xlane.f32.xlu0 %v439_v16 }
 0x272   :  { %v441_v17 = vpop.xlane.xlu0 %440 }
 0x273   :  { %v442_v18 = vsub.f32 %v435_v14, %v441_v17 }
 0x275   :  { %v443_v19 = vmul.f32 1.442695, %v442_v18 }
 0x277   :  { %670 = vpow2.f32 %v443_v19 }
 0x281   :  { %v671_v20 = vpop.eup %670 }
 0x282   :  { %v445_v21 = vsel %vm438_vm7, %v671_v20, 0.0 }
 0x283   :  { %446 = vadd.xlane.f32.xlu0 %v445_v21 }
 0x310   :  { %v447_v22 = vpop.xlane.xlu0 %446 }
 0x311   :  { %672 = vrcp.f32 %v447_v22 }
 0x31b   :  { %v673_v23 = vpop.eup %672 }
 0x31c   :  { %v449_v24 = vmul.f32 %v673_v23, %v671_v20 }
 0x31e   :  { %450 = vst.msk [vmem:[#allocation2] sm:$0x3] %vm438_vm7, %v449_v24 }
 0x31f   :  { %685 = shalt.err (!%p682_p4)
}
 0x320   :  { %s686_s26 = scalar_lea.hbm %s991_s5, 32 }
 0x321   :  { %p687_p5 = scmp.ne.s32.totalorder %s991_s5, %s686_s26  ;;  %p690_p6 = scmp.lt.u32.totalorder %s686_s26, %s991_s5 }
 0x323   :  { %p692_p7 = pnand %p690_p6, %p687_p5 }
 0x325   :  { %695 = shalt.err (!%p692_p7)
}
 0x326   :  { %460 = dma.vmem_to_hbm [thread:$0]  %s458_s23, 32, %s991_s5, [#allocation3]  }
 0x327   :  { %696 = dma.done.wait [#allocation3], 32  }
 0x328   :  { %697 = vsyncadd [#allocation3], 4294967264 }
 0x329   :  { %464 = vsyncpa [#allocation3], 1 }

</bundles_post_ra>
